<compile_context>
chip_gen: v7x
topology: tpu7x:2x2x1
jax: 0.10.0
libtpu: 0.0.40
codegen_flags: <defaults>
</compile_context>

<pallas_src>
import functools

import jax
import jax.numpy as jnp
from jax import lax
from jax.experimental import pallas as pl
from jax.experimental.pallas import tpu as pltpu


def _round_up(x, m):
    return ((x + m - 1) // m) * m


def _vmem_capacity_bytes():
    try:
        info = pltpu.get_tpu_info()
        cap = getattr(info, "vmem_capacity_bytes", None)
        if cap:
            return int(cap)
    except Exception:
        pass
    return 64 * 1024 * 1024          # conservative (v7x per-TC VMEM)


def _choose_tiling(n, fp, op, max_tile, budget_bytes):
    """Pick the query-row tile: largest multiple of 8 such that ~4 live (tq,N)
    f32 temporaries + resident H (f32+bf16) / W / r buffers fit in the budget,
    then balance tiles so node-axis padding stays small."""
    n8 = _round_up(max(n, 1), 8)
    fixed = (2 * n8 * fp * (4 + 2)       # resident H f32 + bf16 (double-buffered)
             + 2 * op * fp * 4           # resident W
             + 2 * 8 * op * 4            # bias (sublane-padded)
             + 2 * 8 * n8 * 4            # rk' row (1, N)
             + 2 * 8 * n8 * 4            # colpart output block (1,1,N)
             + (2 << 20))                # misc slack
    per_row = (4 * n8 * 4                # ~4 live (tq, N) f32 temporaries
               + 4 * fp * 4              # X input block (+ query-row slice)
               + 2 * op * 4              # lin output block
               + 64)                     # t2 / rq' blocks
    avail = budget_bytes - fixed
    if avail <= 0:
        tq_max = 8                       # too big for resident-H design; limp along
    else:
        tq_max = max(8, min(int(max_tile), int(avail // per_row)))
    tq_max = max(8, tq_max - tq_max % 8)
    g = -(-n // tq_max)                  # cdiv
    tq = _round_up(-(-n // g), 8)        # balance tiles -> minimal padding
    return tq, g, tq * g


# --------------------------------------------------------------------------
# Stage 1: per row-tile affinity + linear terms + quadratic partials.
# --------------------------------------------------------------------------
def _affinity_terms_kernel(hf_ref, hb_ref, xq_ref, w_ref, b_ref,
                           rq_ref, rk_ref,
                           lin_ref, t2_ref, colpart_ref,
                           *, tq, two_inv, c1, c2, n_real, n_pad):
    g = pl.program_id(0)
    row0 = pl.multiple_of(g * tq, tq)

    Hk = hf_ref[...]                         # (Np, Fp) f32, resident keys
    Hq = hf_ref[pl.ds(row0, tq), :]          # (tq, Fp) query rows (no 2nd stream)
    Hkb = hb_ref[...]                        # (Np, Fp) bf16 keys
    Xq = xq_ref[...]                         # (tq, Fp)
    W = w_ref[...]                           # (Op, Fp)
    b = b_ref[...]                           # (1,  Op)
    rq = rq_ref[...]                         # (tq, 1)  = inv * |h_q|²
    rk = rk_ref[...]                         # (1,  Np) = inv * |h_k|²

    # ---- Gaussian affinity rows: constants folded into the gram operand -----
    # gram' = (2·inv)·<h_q, h_k>  (f32 MXU: keeps squared-distance cancellation)
    gram2 = lax.dot_general(Hq * two_inv, Hk, (((1,), (1,)), ((), ())),
                            preferred_element_type=jnp.float32)      # (tq, Np)
    neg_ds = jnp.clip(gram2 - rq - rk, -100.0, 0.0)                  # = -clamp(Ds,0,100)
    Wm = jnp.maximum(jnp.exp(neg_ds), 1e-07)
    # softmax(Wm + 1e-7) == softmax(Wm): the constant cancels -> dropped.
    E = jnp.exp(Wm)
    if n_pad != n_real:                      # trace-time branch: mask padded keys
        keymask = lax.broadcasted_iota(jnp.int32, (1, n_pad), 1) < n_real
        E = jnp.where(keymask, E, 0.0)
    denom = jnp.sum(E, axis=1, keepdims=True)                        # (tq, 1)
    A = E * (1.0 / denom)                    # O(tq) exact reciprocals, N² muls

    # ---- linear (MLP) terms, bias hoisted -----------------------------------
    HW = lax.dot_general(Hq, W, (((1,), (1,)), ((), ())),
                         preferred_element_type=jnp.float32)
    XW = lax.dot_general(Xq, W, (((1,), (1,)), ((), ())),
                         preferred_element_type=jnp.float32)
    lin_ref[...] = (c1 * HW + c2 * XW + b).astype(lin_ref.dtype)

    # ---- quadratic interaction pieces (bf16 MXU, f32 accumulate) ------------
    Ab = A.astype(jnp.bfloat16)              # cast once, reused for both dots
    M = lax.dot_general(Ab, Hkb, (((1,), (0,)), ((), ())),
                        preferred_element_type=jnp.float32)          # (tq, Fp)
    t2_ref[...] = jnp.sum(M * M, axis=1, keepdims=True)              # (tq, 1)
    v = jnp.sum(Hq * M, axis=1, keepdims=True)                       # (tq, 1)

    # vᵀ · A_tile → (1, Np): MXU-natural partial of (Aᵀ v)ᵀ — no N² transpose.
    part = lax.dot_general(v.astype(jnp.bfloat16), Ab,
                           (((0,), (0,)), ((), ())),
                           preferred_element_type=jnp.float32)       # (1, Np)
    colpart_ref[...] = part[None]                                    # (1, 1, Np)


# --------------------------------------------------------------------------
# Stage 2: BatchNorm batch statistics (row-tiled, accumulated).
# --------------------------------------------------------------------------
def _bn_stats_kernel(lin_ref, t5_ref, s1_ref, s2_ref, *, tr, n_real, n_pad):
    g = pl.program_id(0)

    @pl.when(g == 0)
    def _():
        s1_ref[...] = jnp.zeros_like(s1_ref)
        s2_ref[...] = jnp.zeros_like(s2_ref)

    x = lin_ref[...] + t5_ref[...]                       # (tr, Op)
    if n_pad != n_real:                                  # exclude padded rows
        rows = g * tr + lax.broadcasted_iota(jnp.int32, (tr, 1), 0)
        x = jnp.where(rows < n_real, x, 0.0)
    s1_ref[...] += jnp.sum(x, axis=0, keepdims=True)
    s2_ref[...] += jnp.sum(x * x, axis=0, keepdims=True)


# --------------------------------------------------------------------------
# Stage 3: BatchNorm apply (row-tiled, parallel).
# --------------------------------------------------------------------------
def _bn_apply_kernel(lin_ref, t5_ref, s1_ref, s2_ref, o_ref, *, inv_n):
    mean = s1_ref[...] * inv_n
    var = jnp.maximum(s2_ref[...] * inv_n - mean * mean, 0.0)
    x = lin_ref[...] + t5_ref[...]
    o_ref[...] = ((x - mean) * lax.rsqrt(var + 1e-05)).astype(o_ref.dtype)


def custom_gnn_layer3(H, X, W, b, *, rho, alpha, beta, scale, row_tile=None):
    """H, X: (N, F); W: (out, F); b: (1, out) or (out,)  ->  (N, out)."""
    N, F_in = H.shape
    out_features = W.shape[0]
    f32 = jnp.float32

    # Lane-dense padding of features / output channels.
    Fp = _round_up(F_in, 128)
    Op = _round_up(out_features, 128)

    # VMEM-aware tiling (generation-aware via get_tpu_info; 64 MiB fallback).
    cap = _vmem_capacity_bytes()
    budget = (cap * 3) // 4
    max_tile = row_tile if row_tile is not None else (512 if cap >= 96 * (1 << 20) else 256)
    tq, G, Np = _choose_tiling(N, Fp, Op, max_tile, budget)

    Hp = jnp.pad(H.astype(f32), ((0, Np - N), (0, Fp - F_in)))
    Xp = jnp.pad(X.astype(f32), ((0, Np - N), (0, Fp - F_in)))
    Wp = jnp.pad(W.astype(f32), ((0, Op - out_features), (0, Fp - F_in)))
    bp = jnp.pad(jnp.reshape(b.astype(f32), (1, out_features)),
                 ((0, 0), (0, Op - out_features)))
    Hb = Hp.astype(jnp.bfloat16)                         # bf16 copy for A·H

    # Precomputed, pre-scaled squared row norms (hoisted out of the kernel).
    scale_c = max(float(scale), 1e-07)
    inv = 1.0 / (2.0 * scale_c * scale_c + 1e-07)
    r_col = jnp.sum(Hp * Hp, axis=1, keepdims=True) * jnp.float32(inv)   # (Np, 1)
    r_row = jnp.reshape(r_col, (1, Np))                                  # (1, Np)

    c1 = 1.0 - 2.0 * rho * alpha
    c2 = 2.0 * rho * alpha

    kernel1 = functools.partial(_affinity_terms_kernel, tq=tq, two_inv=2.0 * inv,
                                c1=c1, c2=c2, n_real=N, n_pad=Np)
    lin, t2, colpart = pl.pallas_call(
        kernel1,
        out_shape=(jax.ShapeDtypeStruct((Np, Op), f32),
                   jax.ShapeDtypeStruct((Np, 1), f32),
                   jax.ShapeDtypeStruct((G, 1, Np), f32)),
        grid_spec=pltpu.PrefetchScalarGridSpec(
            num_scalar_prefetch=0,
            grid=(G,),
            in_specs=[
                pl.BlockSpec((Np, Fp), lambda g: (0, 0)),    # H f32 (resident)
                pl.BlockSpec((Np, Fp), lambda g: (0, 0)),    # H bf16 (resident)
                pl.BlockSpec((tq, Fp), lambda g: (g, 0)),    # X query rows
                pl.BlockSpec((Op, Fp), lambda g: (0, 0)),    # W (resident)
                pl.BlockSpec((1, Op), lambda g: (0, 0)),     # b (resident)
                pl.BlockSpec((tq, 1), lambda g: (g, 0)),     # rq' (scaled)
                pl.BlockSpec((1, Np), lambda g: (0, 0)),     # rk' (resident)
            ],
            out_specs=[
                pl.BlockSpec((tq, Op), lambda g: (g, 0)),    # term1 + term4
                pl.BlockSpec((tq, 1), lambda g: (g, 0)),     # t2 rows
                pl.BlockSpec((1, 1, Np), lambda g: (g, 0, 0)),  # vᵀA partials
            ]),
        compiler_params=pltpu.CompilerParams(
            dimension_semantics=("parallel",),
            vmem_limit_bytes=int(budget)),
    )(Hp, Hb, Xp, Wp, bp, r_col, r_row)

    # O(N) glue: fold column partials, build & normalize term5 (tiny XLA work).
    csum = jnp.sum(colpart, axis=0)                      # (1, Np) = (Aᵀ v)ᵀ
    t3 = 2.0 * jnp.transpose(csum)                       # (Np, 1)
    term5 = (rho * beta) * (t2 + t3)                     # (Np, 1)
    if Np != N:
        rmask = (jnp.arange(Np) < N)[:, None]
        term5 = jnp.where(rmask, term5, 0.0)
    nrm = jnp.sqrt(jnp.sum(term5 * term5))
    inv_nrm = jnp.where(nrm > 0.0, 1.0 / jnp.maximum(nrm, 1e-30), 1.0)
    term5n = term5 * inv_nrm                             # (Np, 1)

    kernel2 = functools.partial(_bn_stats_kernel, tr=tq, n_real=N, n_pad=Np)
    s1, s2 = pl.pallas_call(
        kernel2,
        out_shape=(jax.ShapeDtypeStruct((1, Op), f32),
                   jax.ShapeDtypeStruct((1, Op), f32)),
        grid_spec=pltpu.PrefetchScalarGridSpec(
            num_scalar_prefetch=0,
            grid=(G,),
            in_specs=[pl.BlockSpec((tq, Op), lambda g: (g, 0)),
                      pl.BlockSpec((tq, 1), lambda g: (g, 0))],
            out_specs=[pl.BlockSpec((1, Op), lambda g: (0, 0)),
                       pl.BlockSpec((1, Op), lambda g: (0, 0))]),
        compiler_params=pltpu.CompilerParams(
            dimension_semantics=("arbitrary",),
            vmem_limit_bytes=int(budget)),
    )(lin, term5n)

    kernel3 = functools.partial(_bn_apply_kernel, inv_n=1.0 / N)
    out_p = pl.pallas_call(
        kernel3,
        out_shape=jax.ShapeDtypeStruct((Np, Op), f32),
        grid_spec=pltpu.PrefetchScalarGridSpec(
            num_scalar_prefetch=0,
            grid=(G,),
            in_specs=[pl.BlockSpec((tq, Op), lambda g: (g, 0)),
                      pl.BlockSpec((tq, 1), lambda g: (g, 0)),
                      pl.BlockSpec((1, Op), lambda g: (0, 0)),
                      pl.BlockSpec((1, Op), lambda g: (0, 0))],
            out_specs=pl.BlockSpec((tq, Op), lambda g: (g, 0))),
        compiler_params=pltpu.CompilerParams(
            dimension_semantics=("parallel",),
            vmem_limit_bytes=int(budget)),
    )(lin, term5n, s1, s2)

    return out_p[:N, :out_features]


# --------------------------------------------------------------------------
# Pure-JAX reference (same math, independent XLA code path) for validation.
# --------------------------------------------------------------------------
def _reference_forward(H, X, W, b, *, rho, alpha, beta, scale):
    scale_c = max(float(scale), 1e-07)
    r = jnp.sum(H * H, axis=1, keepdims=True)
    D = jnp.clip(r - 2.0 * H @ H.T + r.T, 0.0, None)
    Ds = jnp.clip(D / (2.0 * scale_c * scale_c + 1e-07), None, 100.0)
    Wg = jnp.clip(jnp.exp(-Ds), 1e-07, None)
    A = jax.nn.softmax(Wg + 1e-07, axis=1)
    term1 = (1.0 - 2.0 * rho * alpha) * (H @ W.T + b)
    term4 = (2.0 * rho * alpha) * (X @ W.T + b)
    M = A @ H
    t2 = jnp.sum(M * M, axis=1, keepdims=True)
    v = jnp.sum(H * M, axis=1, keepdims=True)
    t3 = 2.0 * (A.T @ v)
    term5 = rho * beta * (t2 + t3)
    nrm = jnp.sqrt(jnp.sum(term5 * term5))
    term5 = jnp.where(nrm > 0.0, term5 / jnp.where(nrm > 0.0, nrm, 1.0), term5)
    out = term1 + term4 + term5
    mean = jnp.mean(out, axis=0, keepdims=True)
    var = jnp.mean((out - mean) ** 2, axis=0, keepdims=True)
    return (out - mean) / jnp.sqrt(var + 1e-05)


if __name__ == "__main__":
    # Small shapes consistent with the module (N nodes, F in-features).
    # N deliberately not a multiple of 8 to exercise node-axis padding/masking.
    N, F_in, out_features = 20, 24, 16
    rho, alpha, beta, scale = 0.5, 0.1, 0.05, 1.0

    key = jax.random.PRNGKey(0)
    k_h, k_x, k_w, k_b = jax.random.split(key, 4)

    H = jax.random.normal(k_h, (N, F_in), dtype=jnp.float32)
    X = jax.random.normal(k_x, (N, F_in), dtype=jnp.float32)
    bound = (6.0 / F_in) ** 0.5
    W = jax.random.uniform(k_w, (out_features, F_in), jnp.float32,
                           minval=-bound, maxval=bound)
    b = 0.1 * jax.random.normal(k_b, (1, out_features), dtype=jnp.float32)

    out = custom_gnn_layer3(H, X, W, b, rho=rho, alpha=alpha,
                            beta=beta, scale=scale)
    out = jax.block_until_ready(out)

    assert out.shape == (N, out_features)
    assert bool(jnp.all(jnp.isfinite(out)))

    ref = _reference_forward(H, X, W, b, rho=rho, alpha=alpha,
                             beta=beta, scale=scale)
    err = float(jnp.max(jnp.abs(out - ref)))
    assert err < 5e-2, f"max abs error vs reference: {err}"
    print("KERNEL_OK")
</pallas_src>

<mosaic_0001>
module attributes {stable_mosaic.version = 11 : i64} {
  func.func @_affinity_terms_kernel(%arg0: i32, %arg1: memref<24x128xf32, #tpu.memory_space<vmem>>, %arg2: memref<24x128xbf16, #tpu.memory_space<vmem>>, %arg3: memref<24x128xf32, #tpu.memory_space<vmem>>, %arg4: memref<128x128xf32, #tpu.memory_space<vmem>>, %arg5: memref<1x128xf32, #tpu.memory_space<vmem>>, %arg6: memref<24x1xf32, #tpu.memory_space<vmem>>, %arg7: memref<1x24xf32, #tpu.memory_space<vmem>>, %arg8: memref<24x128xf32, #tpu.memory_space<vmem>>, %arg9: memref<24x1xf32, #tpu.memory_space<vmem>>, %arg10: memref<1x1x24xf32, #tpu.memory_space<vmem>>) attributes {dimension_semantics = [#tpu.dimension_semantics<parallel>], iteration_bounds = array<i64: 1>, scalar_prefetch = 0 : i64, scratch_operands = 0 : i64, tpu.core_type = #tpu.core_type<tc>, window_params = [{pipeline_mode = #tpu.pipeline_mode<synchronous>, transform_indices = @transform_0, window_bounds = array<i64: 24, 128>}, {pipeline_mode = #tpu.pipeline_mode<synchronous>, transform_indices = @transform_1, window_bounds = array<i64: 24, 128>}, {transform_indices = @transform_2, window_bounds = array<i64: 24, 128>}, {pipeline_mode = #tpu.pipeline_mode<synchronous>, transform_indices = @transform_3, window_bounds = array<i64: 128, 128>}, {pipeline_mode = #tpu.pipeline_mode<synchronous>, transform_indices = @transform_4, window_bounds = array<i64: 1, 128>}, {transform_indices = @transform_5, window_bounds = array<i64: 24, 1>}, {pipeline_mode = #tpu.pipeline_mode<synchronous>, transform_indices = @transform_6, window_bounds = array<i64: 1, 24>}, {transform_indices = @transform_7, window_bounds = array<i64: 24, 128>}, {transform_indices = @transform_8, window_bounds = array<i64: 24, 1>}, {transform_indices = @transform_9, window_bounds = array<i64: 1, 1, 24>}]} {
    %c24_i32 = arith.constant 24 : i32
    %0 = arith.muli %arg0, %c24_i32 : i32
    %1 = tpu.assume_multiple %0, 24 : i32
    %c0 = arith.constant 0 : index
    %c0_0 = arith.constant 0 : index
    %2 = vector.load %arg1[%c0, %c0_0] : memref<24x128xf32, #tpu.memory_space<vmem>>, vector<24x128xf32>
    %3 = arith.index_cast %1 : i32 to index
    %c0_1 = arith.constant 0 : index
    %4 = vector.load %arg1[%3, %c0_1] : memref<24x128xf32, #tpu.memory_space<vmem>>, vector<24x128xf32>
    %c0_2 = arith.constant 0 : index
    %c0_3 = arith.constant 0 : index
    %5 = vector.load %arg2[%c0_2, %c0_3] : memref<24x128xbf16, #tpu.memory_space<vmem>>, vector<24x128xbf16>
    %c0_4 = arith.constant 0 : index
    %c0_5 = arith.constant 0 : index
    %6 = vector.load %arg3[%c0_4, %c0_5] : memref<24x128xf32, #tpu.memory_space<vmem>>, vector<24x128xf32>
    %c0_6 = arith.constant 0 : index
    %c0_7 = arith.constant 0 : index
    %7 = vector.load %arg4[%c0_6, %c0_7] : memref<128x128xf32, #tpu.memory_space<vmem>>, vector<128x128xf32>
    %c0_8 = arith.constant 0 : index
    %c0_9 = arith.constant 0 : index
    %8 = vector.load %arg5[%c0_8, %c0_9] : memref<1x128xf32, #tpu.memory_space<vmem>>, vector<1x128xf32>
    %c0_10 = arith.constant 0 : index
    %c0_11 = arith.constant 0 : index
    %9 = vector.load %arg6[%c0_10, %c0_11] : memref<24x1xf32, #tpu.memory_space<vmem>>, vector<24x1xf32>
    %c0_12 = arith.constant 0 : index
    %c0_13 = arith.constant 0 : index
    %10 = vector.load %arg7[%c0_12, %c0_13] : memref<1x24xf32, #tpu.memory_space<vmem>>, vector<1x24xf32>
    %cst = arith.constant 0.99999994 : f32
    %11 = vector.broadcast %cst : f32 to vector<24x128xf32>
    %12 = arith.mulf %4, %11 : vector<24x128xf32>
    %cst_14 = arith.constant dense<0.000000e+00> : vector<24x24xf32>
    %13 = tpu.matmul %12, %2, %cst_14 {dimension_numbers = #tpu.dot_dimension_numbers<[1], [1], [0], [0], [0, 0, 1, 0], [], []>} : vector<24x128xf32>, vector<24x128xf32>, vector<24x24xf32> -> vector<24x24xf32>
    %14 = vector.broadcast %9 : vector<24x1xf32> to vector<24x24xf32>
    %15 = arith.subf %13, %14 : vector<24x24xf32>
    %16 = vector.broadcast %10 : vector<1x24xf32> to vector<24x24xf32>
    %17 = arith.subf %15, %16 : vector<24x24xf32>
    %cst_15 = arith.constant -1.000000e+02 : f32
    %cst_16 = arith.constant 0.000000e+00 : f32
    %18 = vector.broadcast %cst_15 : f32 to vector<24x24xf32>
    %19 = arith.maximumf %18, %17 : vector<24x24xf32>
    %20 = vector.broadcast %cst_16 : f32 to vector<24x24xf32>
    %21 = arith.minimumf %20, %19 : vector<24x24xf32>
    %22 = math.exp %21 : vector<24x24xf32>
    %cst_17 = arith.constant 1.000000e-07 : f32
    %23 = vector.broadcast %cst_17 : f32 to vector<24x24xf32>
    %24 = arith.maximumf %22, %23 : vector<24x24xf32>
    %25 = math.exp %24 : vector<24x24xf32>
    %26 = tpu.iota {dimensions = array<i32: 1>} : vector<1x24xi32>
    %c20_i32 = arith.constant 20 : i32
    %27 = vector.broadcast %c20_i32 : i32 to vector<1x24xi32>
    %28 = arith.cmpi slt, %26, %27 : vector<1x24xi32>
    %cst_18 = arith.constant 0.000000e+00 : f32
    %29 = vector.shape_cast %28 : vector<1x24xi1> to vector<1x24xi1>
    %30 = vector.broadcast %29 : vector<1x24xi1> to vector<24x24xi1>
    %31 = vector.broadcast %cst_18 : f32 to vector<24x24xf32>
    %32 = arith.select %30, %25, %31 : vector<24x24xi1>, vector<24x24xf32>
    %cst_19 = arith.constant dense<0.000000e+00> : vector<24xf32>
    %33 = vector.multi_reduction <add>, %32, %cst_19 [1] : vector<24x24xf32> to vector<24xf32>
    %34 = vector.shape_cast %33 : vector<24xf32> to vector<24x1xf32>
    %cst_20 = arith.constant 1.000000e+00 : f32
    %35 = vector.broadcast %cst_20 : f32 to vector<24x1xf32>
    %36 = arith.divf %35, %34 : vector<24x1xf32>
    %37 = vector.broadcast %36 : vector<24x1xf32> to vector<24x24xf32>
    %38 = arith.mulf %32, %37 : vector<24x24xf32>
    %cst_21 = arith.constant dense<0.000000e+00> : vector<24x128xf32>
    %39 = tpu.matmul %4, %7, %cst_21 {dimension_numbers = #tpu.dot_dimension_numbers<[1], [1], [0], [0], [0, 0, 1, 0], [], []>} : vector<24x128xf32>, vector<128x128xf32>, vector<24x128xf32> -> vector<24x128xf32>
    %cst_22 = arith.constant dense<0.000000e+00> : vector<24x128xf32>
    %40 = tpu.matmul %6, %7, %cst_22 {dimension_numbers = #tpu.dot_dimension_numbers<[1], [1], [0], [0], [0, 0, 1, 0], [], []>} : vector<24x128xf32>, vector<128x128xf32>, vector<24x128xf32> -> vector<24x128xf32>
    %cst_23 = arith.constant 0.899999976 : f32
    %41 = vector.broadcast %cst_23 : f32 to vector<24x128xf32>
    %42 = arith.mulf %41, %39 : vector<24x128xf32>
    %cst_24 = arith.constant 1.000000e-01 : f32
    %43 = vector.broadcast %cst_24 : f32 to vector<24x128xf32>
    %44 = arith.mulf %43, %40 : vector<24x128xf32>
    %45 = arith.addf %42, %44 : vector<24x128xf32>
    %46 = vector.broadcast %8 : vector<1x128xf32> to vector<24x128xf32>
    %47 = arith.addf %45, %46 : vector<24x128xf32>
    %c0_25 = arith.constant 0 : index
    %c0_26 = arith.constant 0 : index
    %48 = vector.load %arg8[%c0_25, %c0_26] : memref<24x128xf32, #tpu.memory_space<vmem>>, vector<24x128xf32>
    tpu.vector_store %arg8[%c0_25, %c0_26], %47 {strides = array<i32>} : memref<24x128xf32, #tpu.memory_space<vmem>>, vector<24x128xf32>,
    %49 = arith.truncf %38 : vector<24x24xf32> to vector<24x24xbf16>
    %cst_27 = arith.constant dense<0.000000e+00> : vector<24x128xf32>
    %50 = tpu.matmul %49, %5, %cst_27 {dimension_numbers = #tpu.dot_dimension_numbers<[1], [0], [0], [1], [0, 0, 1, 1], [], []>} : vector<24x24xbf16>, vector<24x128xbf16>, vector<24x128xf32> -> vector<24x128xf32>
    %51 = arith.mulf %50, %50 : vector<24x128xf32>
    %cst_28 = arith.constant dense<0.000000e+00> : vector<24xf32>
    %52 = vector.multi_reduction <add>, %51, %cst_28 [1] : vector<24x128xf32> to vector<24xf32>
    %53 = vector.shape_cast %52 : vector<24xf32> to vector<24x1xf32>
    %c0_29 = arith.constant 0 : index
    %c0_30 = arith.constant 0 : index
    %54 = vector.load %arg9[%c0_29, %c0_30] : memref<24x1xf32, #tpu.memory_space<vmem>>, vector<24x1xf32>
    tpu.vector_store %arg9[%c0_29, %c0_30], %53 {strides = array<i32>} : memref<24x1xf32, #tpu.memory_space<vmem>>, vector<24x1xf32>,
    %55 = arith.mulf %4, %50 : vector<24x128xf32>
    %cst_31 = arith.constant dense<0.000000e+00> : vector<24xf32>
    %56 = vector.multi_reduction <add>, %55, %cst_31 [1] : vector<24x128xf32> to vector<24xf32>
    %57 = vector.shape_cast %56 : vector<24xf32> to vector<24x1xf32>
    %58 = arith.truncf %57 : vector<24x1xf32> to vector<24x1xbf16>
    %cst_32 = arith.constant dense<0.000000e+00> : vector<1x24xf32>
    %59 = tpu.matmul %58, %49, %cst_32 {dimension_numbers = #tpu.dot_dimension_numbers<[0], [0], [1], [1], [0, 1, 1, 1], [], []>} : vector<24x1xbf16>, vector<24x24xbf16>, vector<1x24xf32> -> vector<1x24xf32>
    %60 = vector.shape_cast %59 : vector<1x24xf32> to vector<1x1x24xf32>
    %c0_33 = arith.constant 0 : index
    %c0_34 = arith.constant 0 : index
    %c0_35 = arith.constant 0 : index
    %61 = vector.load %arg10[%c0_33, %c0_34, %c0_35] : memref<1x1x24xf32, #tpu.memory_space<vmem>>, vector<1x1x24xf32>
    tpu.vector_store %arg10[%c0_33, %c0_34, %c0_35], %60 {strides = array<i32>} : memref<1x1x24xf32, #tpu.memory_space<vmem>>, vector<1x1x24xf32>,
    return
  }
  func.func @transform_0(%arg0: i32) -> (i32, i32) {
    %c0_i32 = arith.constant 0 : i32
    %c0_i32_0 = arith.constant 0 : i32
    %c0_i32_1 = arith.constant 0 : i32
    return %c0_i32, %c0_i32_0 : i32, i32
  }
  func.func @transform_1(%arg0: i32) -> (i32, i32) {
    %c0_i32 = arith.constant 0 : i32
    %c0_i32_0 = arith.constant 0 : i32
    %c0_i32_1 = arith.constant 0 : i32
    return %c0_i32, %c0_i32_0 : i32, i32
  }
  func.func @transform_2(%arg0: i32) -> (i32, i32) {
    %c0_i32 = arith.constant 0 : i32
    %c0_i32_0 = arith.constant 0 : i32
    return %arg0, %c0_i32 : i32, i32
  }
  func.func @transform_3(%arg0: i32) -> (i32, i32) {
    %c0_i32 = arith.constant 0 : i32
    %c0_i32_0 = arith.constant 0 : i32
    %c0_i32_1 = arith.constant 0 : i32
    return %c0_i32, %c0_i32_0 : i32, i32
  }
  func.func @transform_4(%arg0: i32) -> (i32, i32) {
    %c0_i32 = arith.constant 0 : i32
    %c0_i32_0 = arith.constant 0 : i32
    %c0_i32_1 = arith.constant 0 : i32
    return %c0_i32, %c0_i32_0 : i32, i32
  }
  func.func @transform_5(%arg0: i32) -> (i32, i32) {
    %c0_i32 = arith.constant 0 : i32
    %c0_i32_0 = arith.constant 0 : i32
    return %arg0, %c0_i32 : i32, i32
  }
  func.func @transform_6(%arg0: i32) -> (i32, i32) {
    %c0_i32 = arith.constant 0 : i32
    %c0_i32_0 = arith.constant 0 : i32
    %c0_i32_1 = arith.constant 0 : i32
    return %c0_i32, %c0_i32_0 : i32, i32
  }
  func.func @transform_7(%arg0: i32) -> (i32, i32) {
    %c0_i32 = arith.constant 0 : i32
    %c0_i32_0 = arith.constant 0 : i32
    return %arg0, %c0_i32 : i32, i32
  }
  func.func @transform_8(%arg0: i32) -> (i32, i32) {
    %c0_i32 = arith.constant 0 : i32
    %c0_i32_0 = arith.constant 0 : i32
    return %arg0, %c0_i32 : i32, i32
  }
  func.func @transform_9(%arg0: i32) -> (i32, i32, i32) {
    %c0_i32 = arith.constant 0 : i32
    %c0_i32_0 = arith.constant 0 : i32
    %c0_i32_1 = arith.constant 0 : i32
    return %arg0, %c0_i32, %c0_i32_0 : i32, i32, i32
  }
}

</mosaic_0001>

<bundles_post_ra>
// kernel: tpu_custom_call.1
= control target key start
LH: loop header
LB: loop body
LE: loop exit
PB: predicated region body
PF: predicated region fallthrough
CT: control target
= control target key end

     0   :  { %15 = vsyncpa [#allocation3], 0  ;;  %s1247_s0 = inlined_call_operand.vmem [shape: f32[24,128], index: 0, kind: input, shape index: {}]   ;;  %s1248_s1 = inlined_call_operand.hbm [shape: bf16[24,128], index: 1, kind: input, shape index: {}]   ;;  %s1249_s2 = inlined_call_operand.hbm [shape: f32[24,128], index: 2, kind: input, shape index: {}]   ;;  %s1250_s3 = inlined_call_operand.hbm [shape: f32[128,128], index: 3, kind: input, shape index: {}]   ;;  %s1251_s4 = inlined_call_operand.vmem [shape: f32[1,128], index: 4, kind: input, shape index: {}]   ;;  %s1252_s5 = inlined_call_operand.vmem [shape: f32[24,1], index: 5, kind: input, shape index: {}]   ;;  %s1253_s6 = inlined_call_operand.vmem [shape: f32[1,24], index: 6, kind: input, shape index: {}]   ;;  %s1254_s7 = inlined_call_operand.hbm [shape: f32[24,128], index: 7, kind: output, shape index: {0}]   ;;  %s1255_s8 = inlined_call_operand.vmem [shape: f32[24,1], index: 8, kind: output, shape index: {1}]   ;;  %s1256_s9 = inlined_call_operand.hbm [shape: f32[1,1,24], index: 9, kind: output, shape index: {2}]  }
   0x1   :  { %16 = vsyncpa [#allocation6], 0 }
   0x2   :  { %17 = vsyncpa [#allocation4], 0 }
   0x3   :  { %18 = vsyncpa [#allocation10], 0  ;;  %s1015_s30 = smov [#allocation5]   ;;  %s897_s13 = scalar_lea.hbm %s1249_s2, 384 }
   0x4   :  { %s38_s10 = sshll.u32 %s1015_s30, 4  ;;  %p898_p0 = scmp.ne.s32.totalorder %s1249_s2, %s897_s13  ;;  %s39_s10 = int_to_ptr.vmem [resolvable:$true] %s38_s10 }
   0x5   :  { %p901_p1 = scmp.lt.u32.totalorder %s897_s13, %s1249_s2 }
   0x7   :  { %p903_p2 = pnand %p901_p1, %p898_p0 }
   0x9   :  { %906 = shalt.err (!%p903_p2)
}
   0xa   :  { %s907_s18 = scalar_lea.vmem %s39_s10, 384  ;;  %p912_p4 = scmp.lt.s32.totalorder %s39_s10, %s39_s10 }
   0xb   :  { %p908_p3 = scmp.ne.s32.totalorder %s39_s10, %s907_s18  ;;  %p913_p5 = scmp.lt.s32.totalorder %s907_s18, %s907_s18 }
   0xd   :  { %p914_p6 = por %p913_p5, %p912_p4 }
   0xf   :  { %p915_p7 = pnand %p914_p6, %p908_p3 }
  0x11   :  { %918 = shalt.err (!%p915_p7)
}
  0x12   :  { %s1016_s19 = smov 128   ;;  %s1017_s20 = smov 8  }
  0x13   :  { %44 = dma.hbm_to_vmem [thread:$0]  %s1249_s2, 384, %s39_s10, [#allocation6], %s1016_s19, %s1016_s19, %s1017_s20  }
  0x14   :  { %s1018_s23 = smov [#allocation2]   ;;  %s919_s27 = scalar_lea.hbm %s1248_s1, 192 }
  0x15   :  { %s26_s24 = sshll.u32 %s1018_s23, 4  ;;  %p920_p8 = scmp.ne.s32.totalorder %s1248_s1, %s919_s27  ;;  %s27_s24 = int_to_ptr.vmem [resolvable:$true] %s26_s24 }
  0x16   :  { %p923_p9 = scmp.lt.u32.totalorder %s919_s27, %s1248_s1 }
  0x18   :  { %p925_p10 = pnand %p923_p9, %p920_p8 }
  0x1a   :  { %928 = shalt.err (!%p925_p10)
}
  0x1b   :  { %s929_s12 = scalar_lea.vmem %s27_s24, 192  ;;  %p934_p12 = scmp.lt.s32.totalorder %s27_s24, %s27_s24 }
  0x1c   :  { %p930_p11 = scmp.ne.s32.totalorder %s27_s24, %s929_s12  ;;  %p935_p13 = scmp.lt.s32.totalorder %s929_s12, %s929_s12 }
  0x1e   :  { %p936_p0 = por %p935_p13, %p934_p12 }
  0x20   :  { %p937_p1 = pnand %p936_p0, %p930_p11 }
  0x22   :  { %940 = shalt.err (!%p937_p1)
}
  0x23   :  { %s1019_s2 = smov 64   ;;  %s1020_s10 = smov 4  }
  0x24   :  { %32 = dma.hbm_to_vmem [thread:$0]  %s1248_s1, 192, %s27_s24, [#allocation3], %s1019_s2, %s1019_s2, %s1020_s10  }
  0x25   :  { %s1021_s15 = smov [#allocation7]   ;;  %s941_s21 = scalar_lea.hbm %s1250_s3, 2048 }
  0x26   :  { %s50_s16 = sshll.u32 %s1021_s15, 4  ;;  %p942_p2 = scmp.ne.s32.totalorder %s1250_s3, %s941_s21  ;;  %s51_s16 = int_to_ptr.vmem [resolvable:$true] %s50_s16 }
  0x27   :  { %p945_p3 = scmp.lt.u32.totalorder %s941_s21, %s1250_s3 }
  0x29   :  { %p947_p4 = pnand %p945_p3, %p942_p2 }
  0x2b   :  { %950 = shalt.err (!%p947_p4)
}
  0x2c   :  { %s951_s27 = scalar_lea.vmem %s51_s16, 2048  ;;  %p956_p6 = scmp.lt.s32.totalorder %s51_s16, %s51_s16 }
  0x2d   :  { %p952_p5 = scmp.ne.s32.totalorder %s51_s16, %s951_s27  ;;  %p957_p7 = scmp.lt.s32.totalorder %s951_s27, %s951_s27 }
  0x2f   :  { %p958_p8 = por %p957_p7, %p956_p6 }
  0x31   :  { %p959_p9 = pnand %p958_p8, %p952_p5 }
  0x33   :  { %962 = shalt.err (!%p959_p9)
}
  0x34   :  { %56 = dma.hbm_to_vmem [thread:$0]  %s1250_s3, 2048, %s51_s16, [#allocation6], %s1016_s19, %s1016_s19, %s1017_s20  }
  0x35   :  { %1007 = dma.done.wait [#allocation3], 192  }
  0x36   :  { %1008 = vsyncadd [#allocation3], 4294967104 }
  0x37   :  { %1009 = dma.done.wait [#allocation6], 2432  }
  0x38   :  { %1010 = vsyncadd [#allocation6], 4294964864  ;;  %v1022_v0 = vmov 0.0|0.0   ;;  %vm1023_vm0 = vmmov 0   ;;  %v1024_v1 = vmov 0.0   ;;  %v1025_v2 = vmov 0  }
  0x39   :  { %810 = vmatprep.subr.bf16.mxu0 %v1022_v0  ;;  %703 = vmatprep.mubr.msk.f32.mxu0 %vm1023_vm0, %v1024_v1  ;;  %v1129_v3 = vld [vmem:[%s1247_s0] sm:$0xff]  ;;  %v1134_v4 = vld [vmem:[%s1247_s0 + $0x8] sm:$0xff]  ;;  %v106_v7 = vld [vmem:[%s1252_s5 + $0x10] sm:$0xff]  ;;  %vm247_vm2 = vcmask 195584   ;;  %vm464_vm3 = vcmask 1043456   ;;  %vm525_vm4 = vcmask 7168  }
  0x3a   :  { %875 = vset.pattern.permute.xlu0 %v1025_v2  ;;  %876 = vset.pattern.permute.xlu1 %v1025_v2  ;;  %v811_v5 = vpack.c.bf16 %v1134_v4, %v1129_v3  ;;  %v104_v6 = vld [vmem:[%s1252_s5] sm:$0xff]  ;;  %v105_v8 = vld [vmem:[%s1252_s5 + $0x8] sm:$0xff]  ;;  %v1151_v9 = vld [vmem:[%s1247_s0 + $0x10] sm:$0xff]  ;;  %v108_v10 = vmul.f32 0.99999994, %v1129_v3  ;;  %s1026_s26 = smov [#allocation8]  }
  0x3b   :  { %813 = vmatprep.subr.bf16.mxu1 %v1022_v0  ;;  %744 = vmatprep.mubr.msk.f32.mxu1 %vm1023_vm0, %v1024_v1  ;;  %v109_v11 = vmul.f32 0.99999994, %v1134_v4  ;;  %v110_v12 = vmul.f32 0.99999994, %v1151_v9  ;;  %v87_v13 = vld [vmem:[#allocation7] sm:$0xff]  ;;  %v88_v14 = vld [vmem:[#allocation7 + $0x8] sm:$0xff] }
  0x3c   :  { %812 = vmatpush3.bf16.xpose.msra.mxu0 %v811_v5  ;;  %193 = vperm.xlu0 %875, %v104_v6   ;;  %v814_v15 = vpack.c.bf16 %v88_v14, %v87_v13  ;;  %v89_v16 = vld [vmem:[#allocation7 + $0x10] sm:$0xff]  ;;  %v90_v17 = vld [vmem:[#allocation7 + $0x18] sm:$0xff]  ;;  %v91_v19 = vld [vmem:[#allocation7 + $0x20] sm:$0xff]  ;;  %s608_s27 = sshll.u32 %s1026_s26, 4  ;;  %s609_s27 = int_to_ptr.vmem [resolvable:$true] %s608_s27 }
  0x3d   :  { %701 = vmatprep.subr.mxu0 %v1024_v1  ;;  %203 = vperm.xlu1 %876, %v106_v7   ;;  %v817_v18 = vpack.c.bf16 %v90_v17, %v89_v16  ;;  %v92_v20 = vld [vmem:[#allocation7 + $0x28] sm:$0xff]  ;;  %v93_v22 = vld [vmem:[#allocation7 + $0x30] sm:$0xff]  ;;  %v94_v23 = vld [vmem:[#allocation7 + $0x38] sm:$0xff]  ;;  %s963_s1 = scalar_lea.vmem %s609_s27, 384  ;;  %p968_p11 = scmp.lt.s32.totalorder %s609_s27, %s609_s27 }
  0x3e   :  { %815 = vmatpush3.bf16.xpose.msra.mxu1 %v814_v15  ;;  %v820_v21 = vpack.c.bf16 %v92_v20, %v91_v19  ;;  %v823_v24 = vpack.c.bf16 %v94_v23, %v93_v22  ;;  %v95_v25 = vld [vmem:[#allocation7 + $0x40] sm:$0xff]  ;;  %v96_v26 = vld [vmem:[#allocation7 + $0x48] sm:$0xff]  ;;  %v97_v28 = vld [vmem:[#allocation7 + $0x50] sm:$0xff]  ;;  %p964_p10 = scmp.ne.s32.totalorder %s609_s27, %s963_s1  ;;  %p969_p12 = scmp.lt.s32.totalorder %s963_s1, %s963_s1 }
  0x3f   :  { %816 = vmatprep.subr.bf16.mxu1 %v1022_v0  ;;  %v826_v27 = vpack.c.bf16 %v96_v26, %v95_v25  ;;  %v98_v29 = vld [vmem:[#allocation7 + $0x58] sm:$0xff]  ;;  %v99_v31 = vld [vmem:[#allocation7 + $0x60] sm:$0xff]  ;;  %v100_v32 = vld [vmem:[#allocation7 + $0x68] sm:$0xff] }
  0x40   :  { %198 = vperm.xlu0 %875, %v105_v8   ;;  %v829_v30 = vpack.c.bf16 %v98_v29, %v97_v28  ;;  %v832_v33 = vpack.c.bf16 %v100_v32, %v99_v31  ;;  %v639_v35 = vld [vmem:[%s1253_s6] ss:$0 sm:$0xff]  ;;  %v101_v19 = vld [vmem:[#allocation7 + $0x70] sm:$0xff]  ;;  %v84_v22 = vld [vmem:[#allocation5] sm:$0xff]  ;;  %p970_p13 = por %p969_p12, %p968_p11 }
  0x41   :  { %v102_v20 = vld [vmem:[#allocation7 + $0x78] sm:$0xff]  ;;  %v878_v25 = vld [vmem:[#allocation2 + $0x8] ss:$0 sps:$4 sm:$0xff]  }
  0x42   :  { %v877_v23 = vld [vmem:[#allocation2] sm:$0xff]   ;;  %v466_v26 = vsel %vm464_vm3, %v878_v25, 0  ;;  %p971_p0 = pnand %p970_p13, %p964_p10 }
  0x44   :  { %702 = vmatpush3.xpose.msra.mxu0 %v1151_v9 }
  0x45   :  { %837 = vmatprep.subr.bf16.mxu0 %v1022_v0 }
  0x46   :  { %818 = vmatpush3.bf16.xpose.msra.mxu1 %v817_v18 }
  0x47   :  { %704 = vmatmul.mubr.f32.vlgmr.msra.gmra.mrb[0].mxu0 %v108_v10  ;;  %819 = vmatprep.subr.bf16.mxu1 %v1022_v0 }
  0x48   :  { %706 = vmatprep.mubr.msk.f32.mxu0 %vm1023_vm0, %v1024_v1  ;;  %839 = vmatpush3.bf16.xpose.msra.mxu0 %v814_v15 }
  0x49   :  { %840 = vmatprep.subr.bf16.mxu0 %v1022_v0 }
  0x4b   :  { %707 = vmatmul.mubr.f32.gmra.mrb[2].mxu0 %v109_v11 }
  0x4c   :  { %709 = vmatprep.mubr.msk.f32.mxu0 %vm1023_vm0, %v1024_v1 }
  0x4e   :  { %821 = vmatpush3.bf16.xpose.msra.mxu1 %v820_v21 }
  0x4f   :  { %710 = vmatmul.mubr.f32.gmra.mrb[4].mxu0 %v110_v12  ;;  %822 = vmatprep.subr.bf16.mxu1 %v1022_v0 }
  0x50   :  { %785 = vmatprep.mubr.msk.f32.mxu0 %vm1023_vm0, %v1024_v1  ;;  %842 = vmatpush3.bf16.xpose.msra.mxu0 %v817_v18 }
  0x51   :  { %843 = vmatprep.subr.bf16.mxu0 %v1022_v0 }
  0x56   :  { %824 = vmatpush3.bf16.xpose.msra.mxu1 %v823_v24 }
  0x57   :  { %825 = vmatprep.subr.bf16.mxu1 %v1022_v0 }
  0x58   :  { %845 = vmatpush3.bf16.xpose.msra.mxu0 %v820_v21  ;;  %v835_v21 = vpack.c.bf16 %v102_v20, %v101_v19 }
  0x59   :  { %846 = vmatprep.subr.bf16.mxu0 %v1022_v0 }
  0x5e   :  { %827 = vmatpush3.bf16.xpose.msra.mxu1 %v826_v27 }
  0x5f   :  { %828 = vmatprep.subr.bf16.mxu1 %v1022_v0 }
  0x60   :  { %848 = vmatpush3.bf16.xpose.msra.mxu0 %v823_v24  ;;  %v85_v24 = vld [vmem:[#allocation5 + $0x8] sm:$0xff] }
  0x61   :  { %849 = vmatprep.subr.bf16.mxu0 %v1022_v0 }
  0x66   :  { %830 = vmatpush3.bf16.xpose.msra.mxu1 %v829_v30 }
  0x67   :  { %831 = vmatprep.subr.bf16.mxu1 %v1022_v0 }
  0x68   :  { %851 = vmatpush3.bf16.xpose.msra.mxu0 %v826_v27  ;;  %v86_v27 = vld [vmem:[#allocation5 + $0x10] sm:$0xff] }
  0x69   :  { %852 = vmatprep.subr.bf16.mxu0 %v1022_v0 }
  0x6e   :  { %833 = vmatpush3.bf16.xpose.msra.mxu1 %v832_v33 }
  0x6f   :  { %834 = vmatprep.subr.bf16.mxu1 %v1022_v0 }
  0x70   :  { %854 = vmatpush3.bf16.xpose.msra.mxu0 %v829_v30 }
  0x71   :  { %855 = vmatprep.subr.bf16.mxu0 %v1022_v0 }
  0x76   :  { %836 = vmatpush3.bf16.xpose.msra.mxu1 %v835_v21 }
  0x77   :  { %794 = vmatprep.subr.bf16.mxu1 %v877_v23 }
  0x78   :  { %857 = vmatpush3.bf16.xpose.msra.mxu0 %v832_v33 }
  0x79   :  { %858 = vmatprep.subr.bf16.mxu0 %v1022_v0  ;;  %v239_v0 = vlaneseq }
  0x7b   :  { %v240_v7 = vand.u32 127, %v239_v0 }
  0x7d   :  { %vm241_vm1 = vcmp.lt.s32.totalorder %v240_v7, 20  ;;  %745 = vmatmul.mubr.f32.vlgmr.msra.gmra.mrb[0].mxu1 %v1129_v3 }
  0x7e   :  { %747 = vmatprep.mubr.msk.f32.mxu1 %vm1023_vm0, %v1024_v1  ;;  %795 = vmatpush3.bf16.msra.mxu1 %v877_v23 }
  0x7f   :  { %861 = vmatprep.subr.msk.bf16.mxu1 %vm464_vm3, %v878_v25 }
  0x80   :  { %860 = vmatpush3.bf16.xpose.msra.mxu0 %v835_v21 }
  0x81   :  { %748 = vmatmul.mubr.f32.gmra.mrb[2].mxu1 %v1134_v4 }
  0x82   :  { %750 = vmatprep.mubr.msk.f32.mxu1 %vm1023_vm0, %v1024_v1  ;;  %797 = vmatpush3.bf16.msra.mxu1 %v466_v26 }
  0x83   :  { %802 = vmatprep.subr.bf16.mxu1 %v1024_v1 }
  0x85   :  { %751 = vmatmul.mubr.f32.gmra.mrb[4].mxu1 %v1151_v9 }
  0x87   :  { %786 = vmatmul.mubr.f32.vlgmr.msra.gmra.mrb[6].mxu0 %v84_v22 }
  0x88   :  { %788 = vmatprep.mubr.msk.f32.mxu0 %vm1023_vm0, %v1024_v1 }
  0x8b   :  { %789 = vmatmul.mubr.f32.gmra.mrb[8].mxu0 %v85_v24 }
  0x8c   :  { %791 = vmatprep.mubr.msk.f32.mxu0 %vm1023_vm0, %v1024_v1 }
  0x8f   :  { %792 = vmatmul.mubr.f32.gmra.mrb[10].mxu0 %v86_v27 }
  0xbb   :  { %v194_v34 = vpop.permute.xlu0 %193 }
  0xbc   :  { %v204_v45 = vpop.permute.xlu1 %203 }
  0xbf   :  { %v199_v40 = vpop.permute.xlu0 %198 }
 0x11a   :  { %v177_v36 = vpop.f32.mrb[0].mxu0 }
 0x11b   :  { %v206_v37 = vsub.f32 %v177_v36, %v194_v34  ;;  %v705_v38 = vpop.f32.mrb[1].mxu0 }
 0x11d   :  { %v215_v39 = vsub.f32 %v206_v37, %v639_v35 }
 0x11e   :  { %v182_v41 = vpop.f32.mrb[2].mxu0 }
 0x11f   :  { %v218_v42 = vmax.f32 %v215_v39, -100.0  ;;  %v207_v43 = vsub.f32 %v182_v41, %v199_v40  ;;  %v708_v44 = vpop.f32.mrb[3].mxu0 }
 0x121   :  { %v221_v46 = vmin.f32 %v218_v42, 0.0  ;;  %v216_v47 = vsub.f32 %v207_v43, %v639_v35 }
 0x122   :  { %v187_v48 = vpop.f32.mrb[4].mxu0 }
 0x123   :  { %v224_v49 = vmul.f32 1.442695, %v221_v46  ;;  %v219_v50 = vmax.f32 %v216_v47, -100.0  ;;  %v208_v51 = vsub.f32 %v187_v48, %v204_v45  ;;  %v711_v52 = vpop.f32.mrb[5].mxu0  ;;  %v640_v46 = vld [vmem:[%s1251_s4] ss:$0 sm:$0xff] }
 0x125   :  { %879 = vpow2.f32 %v224_v49  ;;  %v222_v53 = vmin.f32 %v219_v50, 0.0  ;;  %v217_v54 = vsub.f32 %v208_v51, %v639_v35 }
 0x127   :  { %v226_v55 = vmul.f32 1.442695, %v222_v53  ;;  %v220_v56 = vmax.f32 %v217_v54, -100.0 }
 0x129   :  { %881 = vpow2.f32 %v226_v55  ;;  %v223_v57 = vmin.f32 %v220_v56, 0.0 }
 0x12b   :  { %v228_v58 = vmul.f32 1.442695, %v223_v57 }
 0x12d   :  { %883 = vpow2.f32 %v228_v58 }
 0x12f   :  { %v880_v59 = vpop.eup %879 }
 0x130   :  { %v230_v60 = vmax.f32 %v880_v59, 1e-07 }
 0x132   :  { %v233_v61 = vmul.f32 1.442695, %v230_v60 }
 0x133   :  { %v882_v62 = vpop.eup %881 }
 0x134   :  { %885 = vpow2.f32 %v233_v61  ;;  %v231_v63 = vmax.f32 %v882_v62, 1e-07 }
 0x136   :  { %v235_v2 = vmul.f32 1.442695, %v231_v63 }
 0x137   :  { %v884_v5 = vpop.eup %883 }
 0x138   :  { %887 = vpow2.f32 %v235_v2  ;;  %v232_v6 = vmax.f32 %v884_v5, 1e-07 }
 0x13a   :  { %v237_v8 = vmul.f32 1.442695, %v232_v6 }
 0x13c   :  { %889 = vpow2.f32 %v237_v8 }
 0x13e   :  { %v886_v10 = vpop.eup %885 }
 0x13f   :  { %v244_v11 = vsel %vm241_vm1, %v886_v10, 0.0 }
 0x140   :  { %v248_v12 = vsel %vm247_vm2, %v244_v11, 0.0 }
 0x141   :  { %249 = vadd.xlane.f32.xlu1 %v248_v12 }
 0x142   :  { %v888_v13 = vpop.eup %887 }
 0x143   :  { %v245_v14 = vsel %vm241_vm1, %v888_v13, 0.0 }
 0x144   :  { %v251_v15 = vsel %vm247_vm2, %v245_v14, 0.0 }
 0x145   :  { %252 = vadd.xlane.f32.xlu0 %v251_v15 }
 0x146   :  { %v890_v16 = vpop.eup %889 }
 0x147   :  { %v246_v17 = vsel %vm241_vm1, %v890_v16, 0.0 }
 0x148   :  { %v254_v18 = vsel %vm247_vm2, %v246_v17, 0.0 }
 0x149   :  { %255 = vadd.xlane.f32.xlu0 %v254_v18 }
 0x150   :  { %v332_v40 = vpop.f32.mrb[0].mxu1 }
 0x151   :  { %v426_v41 = vmul.f32 0.9, %v332_v40  ;;  %v746_v42 = vpop.f32.mrb[1].mxu1 }
 0x154   :  { %v337_v48 = vpop.f32.mrb[2].mxu1 }
 0x155   :  { %v427_v49 = vmul.f32 0.9, %v337_v48  ;;  %v749_v50 = vpop.f32.mrb[3].mxu1 }
 0x158   :  { %v342_v55 = vpop.f32.mrb[4].mxu1 }
 0x159   :  { %v428_v56 = vmul.f32 0.9, %v342_v55  ;;  %v752_v57 = vpop.f32.mrb[5].mxu1 }
 0x15a   :  { %v412_v43 = vpop.f32.mrb[6].mxu0 }
 0x15b   :  { %v429_v44 = vmul.f32 0.1, %v412_v43  ;;  %v787_v45 = vpop.f32.mrb[7].mxu0 }
 0x15d   :  { %v432_v47 = vadd.f32 %v429_v44, %v426_v41 }
 0x15e   :  { %v417_v51 = vpop.f32.mrb[8].mxu0 }
 0x15f   :  { %v441_v52 = vadd.f32 %v640_v46, %v432_v47  ;;  %v790_v53 = vpop.f32.mrb[9].mxu0 }
 0x161   :  { %444 = vst [vmem:[#allocation8] sm:$0xff] %v441_v52 }
 0x162   :  { %v422_v58 = vpop.f32.mrb[10].mxu0 }
 0x163   :  { %v431_v60 = vmul.f32 0.1, %v422_v58  ;;  %v793_v61 = vpop.f32.mrb[11].mxu0 }
 0x165   :  { %v434_v62 = vadd.f32 %v431_v60, %v428_v56 }
 0x167   :  { %v443_v63 = vadd.f32 %v640_v46, %v434_v62 }
 0x169   :  { %446 = vst [vmem:[#allocation8 + $0x10] sm:$0xff] %v443_v63 }
 0x1ce   :  { %v250_v28 = vpop.xlane.xlu1 %249 }
 0x1cf   :  { %891 = vrcp.f32 %v250_v28 }
 0x1d2   :  { %v253_v29 = vpop.xlane.xlu0 %252 }
 0x1d3   :  { %893 = vrcp.f32 %v253_v29 }
 0x1d6   :  { %v256_v30 = vpop.xlane.xlu0 %255 }
 0x1d7   :  { %895 = vrcp.f32 %v256_v30 }
 0x1d9   :  { %v892_v31 = vpop.eup %891 }
 0x1da   :  { %v263_v33 = vmul.f32 %v892_v31, %v244_v11 }
 0x1dd   :  { %v894_v32 = vpop.eup %893 }
 0x1de   :  { %v264_v34 = vmul.f32 %v894_v32, %v245_v14 }
 0x1e0   :  { %v447_v35 = vpack.c.bf16 %v264_v34, %v263_v33 }
 0x1e1   :  { %v896_v36 = vpop.eup %895 }
 0x1e2   :  { %v265_v37 = vmul.f32 %v896_v36, %v246_v17  ;;  %798 = vmatprep.mubr.msk.bf16.mxu1 %vm247_vm2, %v447_v35 }
 0x1e4   :  { %v448_v38 = vpack.c.bf16 %v265_v37, %v265_v37 }
 0x1e6   :  { %799 = vmatmul.mubr.msk.bf16.vlgmr.msra.gmra.mrb[8].mxu1 %vm247_vm2, %v448_v38  ;;  %v559_v39 = vsel %vm464_vm3, %v448_v38, 0 }
 0x1e7   :  { %803 = vmatpush3.bf16.msra.mxu1 %v447_v35  ;;  %806 = vmatprep.mubr.msk.bf16.mxu1 %vm1023_vm0, %v1024_v1 }
 0x1e8   :  { %804 = vmatprep.subr.bf16.mxu1 %v1024_v1  ;;  %v430_v1 = vmul.f32 0.1, %v417_v51 }
 0x1ea   :  { %v433_v54 = vadd.f32 %v430_v1, %v427_v49 }
 0x1eb   :  { %805 = vmatpush3.bf16.msra.mxu1 %v559_v39 }
 0x1ec   :  { %v442_v59 = vadd.f32 %v640_v46, %v433_v54 }
 0x1ee   :  { %445 = vst [vmem:[#allocation8 + $0x8] sm:$0xff] %v442_v59 }
 0x2b9   :  { %v800_v0 = vpop.f32.mrb[8].mxu1 }
 0x2ba   :  { %v502_v2 = vpop.f32.mrb[9].mxu1  ;;  %v531_v10 = vmul.f32 %v800_v0, %v1151_v9  ;;  %v518_v13 = vmul.f32 %v800_v0, %v800_v0 }
 0x2bb   :  { %v801_v5 = vpop.f32.mrb[10].mxu1  ;;  %v529_v6 = vmul.f32 %v502_v2, %v1129_v3  ;;  %v516_v11 = vmul.f32 %v502_v2, %v502_v2 }
 0x2bc   :  { %v505_v7 = vpop.f32.mrb[11].mxu1 }
 0x2bd   :  { %532 = vadd.xlane.f32.xlu1 %v529_v6  ;;  %v530_v8 = vmul.f32 %v505_v7, %v1134_v4  ;;  %v517_v12 = vmul.f32 %v505_v7, %v505_v7 }
 0x2bf   :  { %534 = vadd.xlane.f32.xlu0 %v530_v8 }
 0x2c1   :  { %536 = vadd.xlane.f32.xlu1 %v531_v10 }
 0x2c5   :  { %519 = vadd.xlane.f32.xlu1 %v516_v11 }
 0x2c9   :  { %521 = vadd.xlane.f32.xlu1 %v517_v12 }
 0x2cd   :  { %523 = vadd.xlane.f32.xlu1 %v518_v13 }
 0x34a   :  { %v533_v14 = vpop.xlane.xlu1 %532 }
 0x34c   :  { %v535_v15 = vpop.xlane.xlu0 %534 }
 0x34d   :  { %v538_v16 = vpack.c.bf16 %v535_v15, %v533_v14 }
 0x34e   :  { %v537_v17 = vpop.xlane.xlu1 %536 }
 0x34f   :  { %540 = vxpose.xlu0.c.b16.start [1/2] (short) (narrow) %v538_v16, 16  ;;  %v539_v3 = vpack.c.bf16 %v537_v17, %v537_v17 }
 0x352   :  { %v520_v18 = vpop.xlane.xlu1 %519 }
 0x353   :  { %526 = vst.msk [vmem:[%s1255_s8] sm:$0xff] %vm525_vm4, %v520_v18  ;;  %541 = vxpose.xlu0.c.b16.end [2/2] (short) (narrow) %v539_v3, 16 }
 0x356   :  { %v522_v4 = vpop.xlane.xlu1 %521 }
 0x357   :  { %527 = vst.msk [vmem:[%s1255_s8 + $0x8] sm:$0xff] %vm525_vm4, %v522_v4 }
 0x35a   :  { %v524_v9 = vpop.xlane.xlu1 %523 }
 0x35b   :  { %528 = vst.msk [vmem:[%s1255_s8 + $0x10] sm:$0xff] %vm525_vm4, %v524_v9 }
 0x3b5   :  { %v548_v19 = vpop.trf.xlu0 }
 0x3b6   :  { %807 = vmatmul.mubr.msk.bf16.vlgmr.msra.gmra.mrb[12].mxu1 %vm247_vm2, %v548_v19 }
 0x3b7   :  { %974 = shalt.err (!%p971_p0)
}
 0x3b8   :  { %s975_s28 = scalar_lea.hbm %s1254_s7, 384 }
 0x3b9   :  { %p976_p1 = scmp.ne.s32.totalorder %s1254_s7, %s975_s28  ;;  %p979_p2 = scmp.lt.u32.totalorder %s975_s28, %s1254_s7 }
 0x3bb   :  { %p981_p3 = pnand %p979_p2, %p976_p1 }
 0x3bd   :  { %984 = shalt.err (!%p981_p3)
}
 0x3be   :  { %614 = dma.vmem_to_hbm [thread:$0]  %s609_s27, 384, %s1254_s7, [#allocation4], %s1016_s19, %s1016_s19, %s1017_s20   ;;  %vm601_vm5 = vcmask 188416  }
 0x3bf   :  { %s1027_s10 = smov [#allocation9]  }
 0x3c0   :  { %s623_s13 = sshll.u32 %s1027_s10, 4  ;;  %s624_s13 = int_to_ptr.vmem [resolvable:$true] %s623_s13 }
 0x3c1   :  { %s985_s14 = scalar_lea.vmem %s624_s13, 16  ;;  %s989_s15 = scalar_lea.vmem %s624_s13, 32 }
 0x3c2   :  { %p986_p4 = scmp.ne.s32.totalorder %s624_s13, %s985_s14  ;;  %p990_p5 = scmp.lt.s32.totalorder %s624_s13, %s624_s13 }
 0x3c3   :  { %p991_p6 = scmp.lt.s32.totalorder %s989_s15, %s985_s14 }
 0x3c5   :  { %p992_p7 = por %p991_p6, %p990_p5 }
 0x3c7   :  { %p993_p8 = pnand %p992_p7, %p986_p4 }
 0x489   :  { %v595_v20 = vpop.f32.mrb[12].mxu1 }
 0x48a   :  { %v808_v21 = vpop.f32.mrb[13].mxu1  ;;  %602 = vst.msk [vmem:[#allocation9] sm:$0x1] %vm601_vm5, %v595_v20 }
 0x48b   :  { %v598_v22 = vpop.f32.mrb[14].mxu1 }
 0x48c   :  { %996 = shalt.err (!%p993_p8)
}
 0x48d   :  { %s997_s7 = scalar_lea.hbm %s1256_s9, 16 }
 0x48e   :  { %p998_p9 = scmp.ne.s32.totalorder %s1256_s9, %s997_s7  ;;  %p1001_p10 = scmp.lt.u32.totalorder %s997_s7, %s1256_s9 }
 0x490   :  { %p1003_p11 = pnand %p1001_p10, %p998_p9 }
 0x492   :  { %1006 = shalt.err (!%p1003_p11)
}
 0x493   :  { %626 = dma.vmem_to_hbm [thread:$0]  %s624_s13, 16, %s1256_s9, [#allocation10]   ;;  %v809_v23 = vpop.f32.mrb[15].mxu1 }
 0x494   :  { %1011 = dma.done.wait [#allocation4], 384  }
 0x495   :  { %1012 = vsyncadd [#allocation4], 4294966912 }
 0x496   :  { %1013 = dma.done.wait [#allocation10], 16  }
 0x497   :  { %1014 = vsyncadd [#allocation10], 4294967280 }
 0x498   :  { %635 = vsyncpa [#allocation3], 1 }
 0x499   :  { %636 = vsyncpa [#allocation6], 1 }
 0x49a   :  { %637 = vsyncpa [#allocation4], 1 }
 0x49b   :  { %638 = vsyncpa [#allocation10], 1 }

</bundles_post_ra>
